<compile_context>
chip_gen: v7x
topology: tpu7x:2x2x1
jax: 0.10.0
libtpu: 0.0.40
codegen_flags: <defaults>
</compile_context>

<pallas_src>
import jax
import jax.numpy as jnp
from jax.experimental import pallas as pl
from jax.experimental.pallas import tpu as pltpu


def _round_up(x, m):
    return (x + m - 1) // m * m


# -----------------------------------------------------------------------------
# Kernel 1: lm_head   logits[m, v] = sum_d x[m, d] * W[d, v]       (no bias)
# Tiled (tm, tn, tk) matmul; bf16 MXU inputs, f32 accumulation in VMEM scratch.
# -----------------------------------------------------------------------------
def _lm_head_kernel(x_ref, w_ref, o_ref, acc_ref):
    @pl.when(pl.program_id(2) == 0)
    def _():
        acc_ref[...] = jnp.zeros_like(acc_ref)

    acc_ref[...] += jnp.dot(x_ref[...], w_ref[...],
                            preferred_element_type=jnp.float32)

    @pl.when(pl.program_id(2) == pl.num_programs(2) - 1)
    def _():
        o_ref[...] = acc_ref[...].astype(o_ref.dtype)


def lm_head(final_embeds, w_lm, *, tm=512, tn=1024, tk=512,
            compute_dtype=jnp.bfloat16, out_dtype=None):
    B, S, D = final_embeds.shape
    Dw, V = w_lm.shape
    assert Dw == D
    M = B * S
    out_dtype = final_embeds.dtype if out_dtype is None else out_dtype

    # Clip tiles to the (padded) problem size and keep them (8, 128)-aligned.
    tm = min(_round_up(tm, 8), _round_up(M, 8))
    tn = min(_round_up(tn, 128), _round_up(V, 128))
    tk = min(_round_up(tk, 128), _round_up(D, 128))
    Mp, Np, Kp = _round_up(M, tm), _round_up(V, tn), _round_up(D, tk)

    # bf16 halves the W_lm HBM stream (W is re-streamed once per M-block) and uses
    # the fast MXU path; accumulation stays f32 in the kernel scratch.
    x2d = final_embeds.reshape(M, D)
    if x2d.dtype != compute_dtype:
        x2d = x2d.astype(compute_dtype)
    w = w_lm if w_lm.dtype == compute_dtype else w_lm.astype(compute_dtype)
    # Zero-pad to tile multiples (zeros contribute nothing on the K reduction;
    # extra M/N rows/cols are sliced off afterwards) -> no remainder is dropped.
    if (Mp, Kp) != (M, D):
        x2d = jnp.pad(x2d, ((0, Mp - M), (0, Kp - D)))
    if (Kp, Np) != (D, V):
        w = jnp.pad(w, ((0, Kp - D), (0, Np - V)))

    c_bytes = jnp.dtype(compute_dtype).itemsize
    o_bytes = jnp.dtype(out_dtype).itemsize
    # Double-buffered inputs + double-buffered output + f32 accumulator.
    vmem_need = (2 * (tm * tk + tk * tn) * c_bytes
                 + 2 * tm * tn * o_bytes + tm * tn * 4)
    # Explicit VMEM budget; keep well under v7x's 64 MiB physical VMEM.
    vmem_limit = int(min(max(2 * vmem_need, 16 * 1024 * 1024), 48 * 1024 * 1024))

    grid = (Mp // tm, Np // tn, Kp // tk)
    cost = pl.CostEstimate(
        flops=2 * Mp * Np * Kp,
        transcendentals=0,
        bytes_accessed=(Mp * Kp + grid[0] * Kp * Np) * c_bytes + Mp * Np * o_bytes)

    out = pl.pallas_call(
        _lm_head_kernel,
        out_shape=jax.ShapeDtypeStruct((Mp, Np), out_dtype),
        grid_spec=pltpu.PrefetchScalarGridSpec(
            num_scalar_prefetch=0,
            grid=grid,
            in_specs=[pl.BlockSpec((tm, tk), lambda i, j, k: (i, k)),
                      pl.BlockSpec((tk, tn), lambda i, j, k: (k, j))],
            out_specs=pl.BlockSpec((tm, tn), lambda i, j, k: (i, j)),
            scratch_shapes=[pltpu.VMEM((tm, tn), jnp.float32)]),
        compiler_params=pltpu.CompilerParams(
            dimension_semantics=("parallel", "parallel", "arbitrary"),
            vmem_limit_bytes=vmem_limit),
        cost_estimate=cost,
    )(x2d, w)

    if (Mp, Np) != (M, V):
        out = out[:M, :V]
    return out.reshape(B, S, V)


# -----------------------------------------------------------------------------
# Kernel 2: sensor gather + LinearProbe
#   embeds_for_sensors_idxed[b, p, :] = final_embeds[b, locs[b, p], :]
#   sensors[b, p] = sum_d idxed[b, p, d] * W_probe[p, d] + b_probe[p]
# final_embeds stays in HBM (pl.ANY); only the bB*P needed rows per grid step
# are DMA-gathered (via scalar-prefetched locations in SMEM) into a small VMEM
# scratch, then reduced in f32.  Grid is tiled over batch blocks.
# -----------------------------------------------------------------------------
def _sensor_kernel(locs_ref, x_hbm, w_ref, b_ref, o_ref, xg_ref, sem_ref):
    # locs_ref: SMEM (B, P) int32; x_hbm: HBM (B, S, D); w_ref: VMEM (P, D);
    # b_ref: VMEM (1, P); o_ref: VMEM (bB, P); xg_ref: VMEM (bB, P, D) scratch.
    bB, P, _ = xg_ref.shape
    b0 = pl.program_id(0) * bB

    # Read all SMEM scalars and issue all row-gather DMAs before any wait
    # (keeps sst->sld forwarding intact and overlaps the DMAs).
    copies = []
    for b in range(bB):
        for p in range(P):
            loc = locs_ref[b0 + b, p]   # OOB locs are caught by the DMA bounds check.
            cp = pltpu.make_async_copy(
                x_hbm.at[pl.ds(b0 + b, 1), pl.ds(loc, 1), :],
                xg_ref.at[pl.ds(b, 1), pl.ds(p, 1), :],
                sem_ref.at[b, p])
            cp.start()
            copies.append(cp)
    for cp in copies:
        cp.wait()

    # f32 accumulation regardless of input dtype.
    xg = xg_ref[...].astype(jnp.float32)           # (bB, P, D)
    w = w_ref[...].astype(jnp.float32)             # (P, D)
    sens = jnp.sum(xg * w[None, :, :], axis=-1)    # (bB, P)
    sens = sens + b_ref[...].astype(jnp.float32)   # broadcast (1, P)
    o_ref[...] = sens.astype(o_ref.dtype)


def sensor_probe(final_embeds, sensor_locs, w_probe, b_probe, *, max_batch_block=8):
    B, S, D = final_embeds.shape
    P = w_probe.shape[0]

    # Largest divisor of B that is <= max_batch_block -> exact batch tiling,
    # bounded VMEM scratch for any B.
    bB = 1
    for cand in range(1, min(B, max_batch_block) + 1):
        if B % cand == 0:
            bB = cand
    grid = (B // bB,)

    return pl.pallas_call(
        _sensor_kernel,
        out_shape=jax.ShapeDtypeStruct((B, P), final_embeds.dtype),
        grid_spec=pltpu.PrefetchScalarGridSpec(
            num_scalar_prefetch=1,          # sensor_locs -> SMEM
            grid=grid,
            in_specs=[
                pl.BlockSpec(memory_space=pl.ANY),             # final_embeds (HBM)
                pl.BlockSpec((P, D), lambda i, locs: (0, 0)),  # probe weight
                pl.BlockSpec((1, P), lambda i, locs: (0, 0)),  # probe bias
            ],
            out_specs=pl.BlockSpec((bB, P), lambda i, locs: (i, 0)),
            scratch_shapes=[
                pltpu.VMEM((bB, P, D), final_embeds.dtype),
                pltpu.SemaphoreType.DMA((bB, P)),
            ]),
        compiler_params=pltpu.CompilerParams(
            dimension_semantics=("arbitrary",)),
    )(sensor_locs, final_embeds, w_probe, b_probe.reshape(1, P))


# -----------------------------------------------------------------------------
# Module wrapper (parameters initialized deterministically in-script)
# -----------------------------------------------------------------------------
class ModelWithAnswerPredPallas:
    def __init__(self, key, n_embd, vocab, probe_dim=3):
        k_lm, k_w, k_b = jax.random.split(key, 3)
        # lm_head: Linear(n_embd, vocab, bias=False); stored as (D, V)
        self.w_lm = (jax.random.normal(k_lm, (n_embd, vocab), jnp.float32)
                     / jnp.sqrt(n_embd))
        # get_sensors = LinearProbe(n_embd, probe_dim): weight (P, D), bias (P,)
        self.w_probe = (jax.random.normal(k_w, (probe_dim, n_embd), jnp.float32)
                        / jnp.sqrt(n_embd))
        self.b_probe = jax.random.normal(k_b, (probe_dim,), jnp.float32) * 0.1

    def __call__(self, final_embeds, sensor_locs):
        # logits = call_lm_head(final_embeds)
        logits = lm_head(final_embeds, self.w_lm)
        # get_embeds_for_sensors = Identity (default get_embeds_mode='identity')
        embeds_for_sensors = final_embeds
        # gather at get_all_locs(batch_data) + LinearProbe, no sensor_md_remover
        sensors = sensor_probe(embeds_for_sensors, sensor_locs,
                               self.w_probe, self.b_probe)
        return logits, sensors


if __name__ == "__main__":
    B, S, D, V, P = 2, 16, 256, 512, 3

    key = jax.random.PRNGKey(0)
    k_model, k_x, k_loc = jax.random.split(key, 3)

    model = ModelWithAnswerPredPallas(k_model, n_embd=D, vocab=V, probe_dim=P)

    # final_embeds stands in for transformer(...).last_hidden_state
    final_embeds = jax.random.normal(k_x, (B, S, D), jnp.float32)
    # sensor locations = get_all_locs(batch_data): (B, P) indices into seq
    sensor_locs = jax.random.randint(k_loc, (B, P), 0, S, dtype=jnp.int32)

    logits, sensors = model(final_embeds, sensor_locs)
    jax.block_until_ready((logits, sensors))

    # Also exercise the multi-tile / multi-K-step pipeline path explicitly.
    logits_tiled = lm_head(final_embeds, model.w_lm, tm=16, tn=128, tk=128)
    jax.block_until_ready(logits_tiled)

    # References (plain JAX). The lm_head kernel runs the MXU in bf16 with f32
    # accumulation, so compare against a bf16-rounded-input f32 reference.
    x_bf = final_embeds.astype(jnp.bfloat16).astype(jnp.float32)
    w_bf = model.w_lm.astype(jnp.bfloat16).astype(jnp.float32)
    logits_ref = jnp.einsum("bsd,dv->bsv", x_bf, w_bf,
                            precision=jax.lax.Precision.HIGHEST)
    idxed = final_embeds[jnp.arange(B)[:, None], sensor_locs]          # (B, P, D)
    sensors_ref = jnp.sum(idxed * model.w_probe[None], axis=-1) + model.b_probe

    assert logits.shape == (B, S, V) and sensors.shape == (B, P)
    assert jnp.allclose(logits, logits_ref, atol=2e-3, rtol=2e-3)
    assert jnp.allclose(logits_tiled, logits_ref, atol=2e-3, rtol=2e-3)
    assert jnp.allclose(sensors, sensors_ref, atol=1e-4, rtol=1e-4)

    print("KERNEL_OK")
</pallas_src>

<mosaic_0001>
module attributes {stable_mosaic.version = 11 : i64} {
  func.func @_lm_head_kernel(%arg0: i32, %arg1: i32, %arg2: i32, %arg3: memref<32x256xbf16, #tpu.memory_space<vmem>>, %arg4: memref<256x512xbf16, #tpu.memory_space<vmem>>, %arg5: memref<32x512xf32, #tpu.memory_space<vmem>>, %arg6: memref<32x512xf32, #tpu.memory_space<vmem>>) attributes {dimension_semantics = [#tpu.dimension_semantics<parallel>, #tpu.dimension_semantics<parallel>, #tpu.dimension_semantics<arbitrary>], iteration_bounds = array<i64: 1, 1, 1>, scalar_prefetch = 0 : i64, scratch_operands = 1 : i64, tpu.core_type = #tpu.core_type<tc>, window_params = [{transform_indices = @transform_0, window_bounds = array<i64: 32, 256>}, {transform_indices = @transform_1, window_bounds = array<i64: 256, 512>}, {transform_indices = @transform_2, window_bounds = array<i64: 32, 512>}]} {
    %c0_i32 = arith.constant 0 : i32
    %0 = arith.cmpi eq, %arg2, %c0_i32 : i32
    %1 = arith.extui %0 : i1 to i32
    %c0_i32_0 = arith.constant 0 : i32
    %2 = arith.cmpi ne, %1, %c0_i32_0 : i32
    scf.if %2 {
      %cst_10 = arith.constant 0.000000e+00 : f32
      %12 = vector.broadcast %cst_10 : f32 to vector<32x512xf32>
      %c0_11 = arith.constant 0 : index
      %c0_12 = arith.constant 0 : index
      %13 = vector.load %arg6[%c0_11, %c0_12] : memref<32x512xf32, #tpu.memory_space<vmem>>, vector<32x512xf32>
      tpu.vector_store %arg6[%c0_11, %c0_12], %12 {strides = array<i32>} : memref<32x512xf32, #tpu.memory_space<vmem>>, vector<32x512xf32>,
    } else {
    }
    %c0 = arith.constant 0 : index
    %c0_1 = arith.constant 0 : index
    %3 = vector.load %arg6[%c0, %c0_1] : memref<32x512xf32, #tpu.memory_space<vmem>>, vector<32x512xf32>
    %c0_2 = arith.constant 0 : index
    %c0_3 = arith.constant 0 : index
    %4 = vector.load %arg3[%c0_2, %c0_3] : memref<32x256xbf16, #tpu.memory_space<vmem>>, vector<32x256xbf16>
    %c0_4 = arith.constant 0 : index
    %c0_5 = arith.constant 0 : index
    %5 = vector.load %arg4[%c0_4, %c0_5] : memref<256x512xbf16, #tpu.memory_space<vmem>>, vector<256x512xbf16>
    %cst = arith.constant dense<0.000000e+00> : vector<32x512xf32>
    %6 = tpu.matmul %4, %5, %cst {dimension_numbers = #tpu.dot_dimension_numbers<[1], [0], [0], [1], [0, 0, 1, 1], [], []>} : vector<32x256xbf16>, vector<256x512xbf16>, vector<32x512xf32> -> vector<32x512xf32>
    %7 = arith.addf %3, %6 : vector<32x512xf32>
    %c0_6 = arith.constant 0 : index
    %c0_7 = arith.constant 0 : index
    %8 = vector.load %arg6[%c0_6, %c0_7] : memref<32x512xf32, #tpu.memory_space<vmem>>, vector<32x512xf32>
    tpu.vector_store %arg6[%c0_6, %c0_7], %7 {strides = array<i32>} : memref<32x512xf32, #tpu.memory_space<vmem>>, vector<32x512xf32>,
    %c0_i32_8 = arith.constant 0 : i32
    %9 = arith.cmpi eq, %arg2, %c0_i32_8 : i32
    %10 = arith.extui %9 : i1 to i32
    %c0_i32_9 = arith.constant 0 : i32
    %11 = arith.cmpi ne, %10, %c0_i32_9 : i32
    scf.if %11 {
      %c0_10 = arith.constant 0 : index
      %c0_11 = arith.constant 0 : index
      %12 = vector.load %arg6[%c0_10, %c0_11] : memref<32x512xf32, #tpu.memory_space<vmem>>, vector<32x512xf32>
      %c0_12 = arith.constant 0 : index
      %c0_13 = arith.constant 0 : index
      %13 = vector.load %arg5[%c0_12, %c0_13] : memref<32x512xf32, #tpu.memory_space<vmem>>, vector<32x512xf32>
      tpu.vector_store %arg5[%c0_12, %c0_13], %12 {strides = array<i32>} : memref<32x512xf32, #tpu.memory_space<vmem>>, vector<32x512xf32>,
    } else {
    }
    return
  }
  func.func @transform_0(%arg0: i32, %arg1: i32, %arg2: i32) -> (i32, i32) {
    %c0_i32 = arith.constant 0 : i32
    return %arg0, %arg2 : i32, i32
  }
  func.func @transform_1(%arg0: i32, %arg1: i32, %arg2: i32) -> (i32, i32) {
    %c0_i32 = arith.constant 0 : i32
    return %arg2, %arg1 : i32, i32
  }
  func.func @transform_2(%arg0: i32, %arg1: i32, %arg2: i32) -> (i32, i32) {
    %c0_i32 = arith.constant 0 : i32
    return %arg0, %arg1 : i32, i32
  }
}

</mosaic_0001>

<bundles_post_ra>
// kernel: tpu_custom_call.1
= control target key start
LH: loop header
LB: loop body
LE: loop exit
PB: predicated region body
PF: predicated region fallthrough
CT: control target
= control target key end

     0   :  { %7 = vsyncpa [#allocation4], 0  ;;  %s986_s0 = inlined_call_operand.hbm [shape: bf16[32,256], index: 0, kind: input, shape index: {}]   ;;  %s987_s1 = inlined_call_operand.hbm [shape: bf16[256,512], index: 1, kind: input, shape index: {}]   ;;  %s988_s2 = inlined_call_operand.hbm [shape: f32[32,512], index: 2, kind: output, shape index: {}]  }
   0x1   :  { %8 = vsyncpa [#allocation7], 0 }
   0x2   :  { %9 = vsyncpa [#allocation5], 0  ;;  %s926_s9 = smov [#allocation3]   ;;  %s854_s13 = scalar_lea.hbm %s986_s0, 512 }
   0x3   :  { %s15_s10 = sshll.u32 %s926_s9, 4  ;;  %p855_p0 = scmp.ne.s32.totalorder %s986_s0, %s854_s13  ;;  %s16_s10 = int_to_ptr.vmem [resolvable:$true] %s15_s10 }
   0x4   :  { %p858_p1 = scmp.lt.u32.totalorder %s854_s13, %s986_s0 }
   0x6   :  { %p860_p2 = pnand %p858_p1, %p855_p0 }
   0x8   :  { %863 = shalt.err (!%p860_p2)
}
   0x9   :  { %s864_s18 = scalar_lea.vmem %s16_s10, 512  ;;  %p869_p4 = scmp.lt.s32.totalorder %s16_s10, %s16_s10 }
   0xa   :  { %p865_p3 = scmp.ne.s32.totalorder %s16_s10, %s864_s18  ;;  %p870_p5 = scmp.lt.s32.totalorder %s864_s18, %s864_s18 }
   0xc   :  { %p871_p6 = por %p870_p5, %p869_p4 }
   0xe   :  { %p872_p7 = pnand %p871_p6, %p865_p3 }
  0x10   :  { %875 = shalt.err (!%p872_p7)
}
  0x11   :  { %s927_s19 = smov 128   ;;  %s928_s20 = smov 8  }
  0x12   :  { %21 = dma.hbm_to_vmem [thread:$0]  %s986_s0, 512, %s16_s10, [#allocation4], %s927_s19, %s927_s19, %s928_s20  }
  0x13   :  { %s929_s23 = smov [#allocation6]   ;;  %s876_s27 = scalar_lea.hbm %s987_s1, 8192 }
  0x14   :  { %s27_s24 = sshll.u32 %s929_s23, 4  ;;  %p877_p8 = scmp.ne.s32.totalorder %s987_s1, %s876_s27  ;;  %s28_s24 = int_to_ptr.vmem [resolvable:$true] %s27_s24 }
  0x15   :  { %p880_p9 = scmp.lt.u32.totalorder %s876_s27, %s987_s1 }
  0x17   :  { %p882_p10 = pnand %p880_p9, %p877_p8 }
  0x19   :  { %885 = shalt.err (!%p882_p10)
}
  0x1a   :  { %s886_s4 = scalar_lea.vmem %s28_s24, 8192  ;;  %p891_p12 = scmp.lt.s32.totalorder %s28_s24, %s28_s24 }
  0x1b   :  { %p887_p11 = scmp.ne.s32.totalorder %s28_s24, %s886_s4  ;;  %p892_p13 = scmp.lt.s32.totalorder %s886_s4, %s886_s4 }
  0x1d   :  { %p893_p0 = por %p892_p13, %p891_p12 }
  0x1f   :  { %p894_p1 = pnand %p893_p0, %p887_p11 }
  0x21   :  { %897 = shalt.err (!%p894_p1)
}
  0x22   :  { %s930_s0 = smov 256   ;;  %s931_s5 = smov 16  }
  0x23   :  { %33 = dma.hbm_to_vmem [thread:$0]  %s987_s1, 8192, %s28_s24, [#allocation7], %s930_s0, %s930_s0, %s931_s5  }
  0x24   :  { %920 = dma.done.wait [#allocation4], 512  }
  0x25   :  { %921 = vsyncadd [#allocation4], 4294966784 }
  0x26   :  { %922 = dma.done.wait [#allocation7], 8192  }
  0x27   :  { %923 = vsyncadd [#allocation7], 4294959104  ;;  %v752_v0 = vld [vmem:[#allocation6 + $0x4] ss:$16 sps:$4 sm:$0xff]   ;;  %v754_v1 = vld [vmem:[#allocation6 + $0xc] ss:$16 sps:$4 sm:$0xff]  }
  0x28   :  { %484 = vmatprep.subr.bf16.mxu0 %v752_v0  ;;  %v756_v2 = vld [vmem:[#allocation6] ss:$16 sps:$4 sm:$0xff]   ;;  %v757_v3 = vld [vmem:[#allocation6 + $0x8] ss:$16 sps:$4 sm:$0xff]   ;;  %537 = vmatprep.subr.bf16.mxu1 %v754_v1  ;;  %v758_v4 = vld [vmem:[#allocation6 + $0x24] ss:$16 sps:$4 sm:$0xff]  }
  0x29   :  { %485 = vmatpush1.bf16.msra.mxu0 %v756_v2  ;;  %538 = vmatpush1.bf16.msra.mxu1 %v757_v3  ;;  %v760_v5 = vld [vmem:[#allocation6 + $0x2c] ss:$16 sps:$4 sm:$0xff]   ;;  %v762_v6 = vld [vmem:[#allocation6 + $0x20] ss:$16 sps:$4 sm:$0xff]   ;;  %v763_v7 = vld [vmem:[#allocation6 + $0x28] ss:$16 sps:$4 sm:$0xff]  }
  0x2a   :  { %486 = vmatprep.subr.bf16.mxu0 %v758_v4  ;;  %539 = vmatprep.subr.bf16.mxu1 %v760_v5  ;;  %v764_v8 = vld [vmem:[#allocation6 + $0x44] ss:$16 sps:$4 sm:$0xff]   ;;  %v766_v9 = vld [vmem:[#allocation6 + $0x4c] ss:$16 sps:$4 sm:$0xff]   ;;  %v768_v10 = vld [vmem:[#allocation6 + $0x40] ss:$16 sps:$4 sm:$0xff]  }
  0x2b   :  { %v769_v11 = vld [vmem:[#allocation6 + $0x48] ss:$16 sps:$4 sm:$0xff]   ;;  %v770_v12 = vld [vmem:[#allocation6 + $0x64] ss:$16 sps:$4 sm:$0xff]   ;;  %v772_v13 = vld [vmem:[#allocation6 + $0x6c] ss:$16 sps:$4 sm:$0xff]  }
  0x2c   :  { %v774_v14 = vld [vmem:[#allocation6 + $0x60] ss:$16 sps:$4 sm:$0xff]   ;;  %v775_v15 = vld [vmem:[#allocation6 + $0x68] ss:$16 sps:$4 sm:$0xff]   ;;  %v776_v16 = vld [vmem:[#allocation6 + $0x84] ss:$16 sps:$4 sm:$0xff]  }
  0x2d   :  { %487 = vmatpush1.bf16.msra.mxu0 %v762_v6  ;;  %540 = vmatpush1.bf16.msra.mxu1 %v763_v7  ;;  %v778_v17 = vld [vmem:[#allocation6 + $0x8c] ss:$16 sps:$4 sm:$0xff]   ;;  %v780_v18 = vld [vmem:[#allocation6 + $0x80] ss:$16 sps:$4 sm:$0xff]   ;;  %v781_v19 = vld [vmem:[#allocation6 + $0x88] ss:$16 sps:$4 sm:$0xff]  }
  0x2e   :  { %488 = vmatprep.subr.bf16.mxu0 %v764_v8  ;;  %541 = vmatprep.subr.bf16.mxu1 %v766_v9  ;;  %v782_v20 = vld [vmem:[#allocation6 + $0xa4] ss:$16 sps:$4 sm:$0xff]   ;;  %v784_v21 = vld [vmem:[#allocation6 + $0xac] ss:$16 sps:$4 sm:$0xff]   ;;  %v786_v22 = vld [vmem:[#allocation6 + $0xa0] ss:$16 sps:$4 sm:$0xff]  }
  0x2f   :  { %v787_v23 = vld [vmem:[#allocation6 + $0xa8] ss:$16 sps:$4 sm:$0xff]   ;;  %v788_v24 = vld [vmem:[#allocation6 + $0xc4] ss:$16 sps:$4 sm:$0xff]   ;;  %v790_v25 = vld [vmem:[#allocation6 + $0xcc] ss:$16 sps:$4 sm:$0xff]  }
  0x30   :  { %v792_v26 = vld [vmem:[#allocation6 + $0xc0] ss:$16 sps:$4 sm:$0xff]   ;;  %v793_v27 = vld [vmem:[#allocation6 + $0xc8] ss:$16 sps:$4 sm:$0xff]   ;;  %v794_v28 = vld [vmem:[#allocation6 + $0xe4] ss:$16 sps:$4 sm:$0xff]  }
  0x31   :  { %489 = vmatpush1.bf16.msra.mxu0 %v768_v10  ;;  %542 = vmatpush1.bf16.msra.mxu1 %v769_v11  ;;  %v796_v29 = vld [vmem:[#allocation6 + $0xec] ss:$16 sps:$4 sm:$0xff]   ;;  %v798_v30 = vld [vmem:[#allocation6 + $0xe0] ss:$16 sps:$4 sm:$0xff]   ;;  %v799_v31 = vld [vmem:[#allocation6 + $0xe8] ss:$16 sps:$4 sm:$0xff]  }
  0x32   :  { %490 = vmatprep.subr.bf16.mxu0 %v770_v12  ;;  %543 = vmatprep.subr.bf16.mxu1 %v772_v13  ;;  %v800_v32 = vld [vmem:[#allocation6 + $0x104] ss:$16 sps:$4 sm:$0xff]   ;;  %v802_v33 = vld [vmem:[#allocation6 + $0x10c] ss:$16 sps:$4 sm:$0xff]   ;;  %v804_v34 = vld [vmem:[#allocation6 + $0x100] ss:$16 sps:$4 sm:$0xff]  }
  0x33   :  { %v805_v35 = vld [vmem:[#allocation6 + $0x108] ss:$16 sps:$4 sm:$0xff]   ;;  %v806_v36 = vld [vmem:[#allocation6 + $0x124] ss:$16 sps:$4 sm:$0xff]   ;;  %v808_v37 = vld [vmem:[#allocation6 + $0x12c] ss:$16 sps:$4 sm:$0xff]  }
  0x34   :  { %v810_v38 = vld [vmem:[#allocation6 + $0x120] ss:$16 sps:$4 sm:$0xff]   ;;  %v811_v39 = vld [vmem:[#allocation6 + $0x128] ss:$16 sps:$4 sm:$0xff]   ;;  %v812_v40 = vld [vmem:[#allocation6 + $0x144] ss:$16 sps:$4 sm:$0xff]  }
  0x35   :  { %491 = vmatpush1.bf16.msra.mxu0 %v774_v14  ;;  %544 = vmatpush1.bf16.msra.mxu1 %v775_v15  ;;  %v814_v41 = vld [vmem:[#allocation6 + $0x14c] ss:$16 sps:$4 sm:$0xff]   ;;  %v816_v42 = vld [vmem:[#allocation6 + $0x140] ss:$16 sps:$4 sm:$0xff]   ;;  %v817_v43 = vld [vmem:[#allocation6 + $0x148] ss:$16 sps:$4 sm:$0xff]  }
  0x36   :  { %492 = vmatprep.subr.bf16.mxu0 %v776_v16  ;;  %545 = vmatprep.subr.bf16.mxu1 %v778_v17  ;;  %v818_v44 = vld [vmem:[#allocation6 + $0x164] ss:$16 sps:$4 sm:$0xff]   ;;  %v820_v45 = vld [vmem:[#allocation6 + $0x16c] ss:$16 sps:$4 sm:$0xff]   ;;  %v822_v46 = vld [vmem:[#allocation6 + $0x160] ss:$16 sps:$4 sm:$0xff]  }
  0x37   :  { %v850_v47 = vld [vmem:[#allocation3 + $0x4] ss:$8 sps:$4 sm:$0xff]   ;;  %v823_v48 = vld [vmem:[#allocation6 + $0x168] ss:$16 sps:$4 sm:$0xff]   ;;  %v828_v51 = vld [vmem:[#allocation6 + $0x180] ss:$16 sps:$4 sm:$0xff]  }
  0x38   :  { %v824_v49 = vld [vmem:[#allocation6 + $0x184] ss:$16 sps:$4 sm:$0xff]   ;;  %v826_v50 = vld [vmem:[#allocation6 + $0x18c] ss:$16 sps:$4 sm:$0xff]   ;;  %516 = vmatprep.mubr.bf16.mxu0 %v850_v47  ;;  %569 = vmatprep.mubr.bf16.mxu1 %v850_v47  ;;  %v829_v52 = vld [vmem:[#allocation6 + $0x188] ss:$16 sps:$4 sm:$0xff]  }
  0x39   :  { %493 = vmatpush1.bf16.msra.mxu0 %v780_v18  ;;  %546 = vmatpush1.bf16.msra.mxu1 %v781_v19  ;;  %v830_v53 = vld [vmem:[#allocation6 + $0x1a4] ss:$16 sps:$4 sm:$0xff]   ;;  %v832_v54 = vld [vmem:[#allocation6 + $0x1ac] ss:$16 sps:$4 sm:$0xff]   ;;  %v834_v55 = vld [vmem:[#allocation6 + $0x1a0] ss:$16 sps:$4 sm:$0xff]  }
  0x3a   :  { %494 = vmatprep.subr.bf16.mxu0 %v782_v20  ;;  %547 = vmatprep.subr.bf16.mxu1 %v784_v21  ;;  %v835_v56 = vld [vmem:[#allocation6 + $0x1a8] ss:$16 sps:$4 sm:$0xff]   ;;  %v836_v57 = vld [vmem:[#allocation6 + $0x1c4] ss:$16 sps:$4 sm:$0xff]   ;;  %v838_v58 = vld [vmem:[#allocation6 + $0x1cc] ss:$16 sps:$4 sm:$0xff]  }
  0x3b   :  { %v840_v59 = vld [vmem:[#allocation6 + $0x1c0] ss:$16 sps:$4 sm:$0xff]   ;;  %v841_v60 = vld [vmem:[#allocation6 + $0x1c8] ss:$16 sps:$4 sm:$0xff]   ;;  %v842_v61 = vld [vmem:[#allocation6 + $0x1e4] ss:$16 sps:$4 sm:$0xff]  }
  0x3c   :  { %v844_v62 = vld [vmem:[#allocation6 + $0x1ec] ss:$16 sps:$4 sm:$0xff]   ;;  %v846_v63 = vld [vmem:[#allocation6 + $0x1e0] ss:$16 sps:$4 sm:$0xff]   ;;  %v847_v0 = vld [vmem:[#allocation6 + $0x1e8] ss:$16 sps:$4 sm:$0xff]  }
  0x3d   :  { %495 = vmatpush1.bf16.msra.mxu0 %v786_v22  ;;  %548 = vmatpush1.bf16.msra.mxu1 %v787_v23  ;;  %v848_v1 = vld [vmem:[#allocation3] ss:$8 sps:$4 sm:$0xff]   ;;  %v851_v2 = vld [vmem:[#allocation3 + $0x14] ss:$8 sps:$4 sm:$0xff]   ;;  %v853_v3 = vld [vmem:[#allocation3 + $0x10] ss:$8 sps:$4 sm:$0xff]  }
  0x3e   :  { %496 = vmatprep.subr.bf16.mxu0 %v788_v24  ;;  %549 = vmatprep.subr.bf16.mxu1 %v790_v25  ;;  %s932_s1 = smov [#allocation8]  }
  0x3f   :  { %s662_s8 = sshll.u32 %s932_s1, 4  ;;  %s663_s8 = int_to_ptr.vmem [resolvable:$true] %s662_s8 }
  0x40   :  { %s898_s9 = scalar_lea.vmem %s663_s8, 2048  ;;  %p903_p3 = scmp.lt.s32.totalorder %s663_s8, %s663_s8 }
  0x41   :  { %497 = vmatpush1.bf16.msra.mxu0 %v792_v26  ;;  %550 = vmatpush1.bf16.msra.mxu1 %v793_v27  ;;  %p899_p2 = scmp.ne.s32.totalorder %s663_s8, %s898_s9  ;;  %p904_p4 = scmp.lt.s32.totalorder %s898_s9, %s898_s9 }
  0x42   :  { %498 = vmatprep.subr.bf16.mxu0 %v794_v28  ;;  %551 = vmatprep.subr.bf16.mxu1 %v796_v29 }
  0x43   :  { %p905_p5 = por %p904_p4, %p903_p3 }
  0x45   :  { %499 = vmatpush1.bf16.msra.mxu0 %v798_v30  ;;  %552 = vmatpush1.bf16.msra.mxu1 %v799_v31  ;;  %p906_p6 = pnand %p905_p5, %p899_p2 }
  0x46   :  { %500 = vmatprep.subr.bf16.mxu0 %v800_v32  ;;  %553 = vmatprep.subr.bf16.mxu1 %v802_v33 }
  0x49   :  { %501 = vmatpush1.bf16.msra.mxu0 %v804_v34  ;;  %554 = vmatpush1.bf16.msra.mxu1 %v805_v35 }
  0x4a   :  { %502 = vmatprep.subr.bf16.mxu0 %v806_v36  ;;  %555 = vmatprep.subr.bf16.mxu1 %v808_v37 }
  0x4d   :  { %503 = vmatpush1.bf16.msra.mxu0 %v810_v38  ;;  %556 = vmatpush1.bf16.msra.mxu1 %v811_v39 }
  0x4e   :  { %504 = vmatprep.subr.bf16.mxu0 %v812_v40  ;;  %557 = vmatprep.subr.bf16.mxu1 %v814_v41 }
  0x51   :  { %505 = vmatpush1.bf16.msra.mxu0 %v816_v42  ;;  %558 = vmatpush1.bf16.msra.mxu1 %v817_v43 }
  0x52   :  { %506 = vmatprep.subr.bf16.mxu0 %v818_v44  ;;  %559 = vmatprep.subr.bf16.mxu1 %v820_v45 }
  0x55   :  { %507 = vmatpush1.bf16.msra.mxu0 %v822_v46  ;;  %560 = vmatpush1.bf16.msra.mxu1 %v823_v48 }
  0x56   :  { %508 = vmatprep.subr.bf16.mxu0 %v824_v49  ;;  %561 = vmatprep.subr.bf16.mxu1 %v826_v50 }
  0x59   :  { %509 = vmatpush1.bf16.msra.mxu0 %v828_v51  ;;  %562 = vmatpush1.bf16.msra.mxu1 %v829_v52 }
  0x5a   :  { %510 = vmatprep.subr.bf16.mxu0 %v830_v53  ;;  %563 = vmatprep.subr.bf16.mxu1 %v832_v54 }
  0x5d   :  { %511 = vmatpush1.bf16.msra.mxu0 %v834_v55  ;;  %564 = vmatpush1.bf16.msra.mxu1 %v835_v56 }
  0x5e   :  { %512 = vmatprep.subr.bf16.mxu0 %v836_v57  ;;  %565 = vmatprep.subr.bf16.mxu1 %v838_v58 }
  0x61   :  { %513 = vmatpush1.bf16.msra.mxu0 %v840_v59  ;;  %566 = vmatpush1.bf16.msra.mxu1 %v841_v60 }
  0x62   :  { %514 = vmatprep.subr.bf16.mxu0 %v842_v61  ;;  %567 = vmatprep.subr.bf16.mxu1 %v844_v62 }
  0x65   :  { %515 = vmatpush1.bf16.msra.mxu0 %v846_v63  ;;  %568 = vmatpush1.bf16.msra.mxu1 %v847_v0 }
  0x68   :  { %517 = vmatmul.mubr.bf16.vlgmr.msra.gmra.mrb[0].mxu0 %v848_v1  ;;  %570 = vmatmul.mubr.bf16.vlgmr.msra.gmra.mrb[0].mxu1 %v848_v1 }
  0x69   :  { %526 = vmatprep.mubr.bf16.mxu0 %v851_v2  ;;  %579 = vmatprep.mubr.bf16.mxu1 %v851_v2 }
  0x70   :  { %527 = vmatmul.mubr.bf16.gmra.mrb[4].mxu0 %v853_v3  ;;  %580 = vmatmul.mubr.bf16.gmra.mrb[4].mxu1 %v853_v3 }
 0x13b   :  { %v518_v4 = vpop.f32.mrb[0].mxu0  ;;  %v571_v5 = vpop.f32.mrb[0].mxu1 }
 0x13c   :  { %641 = vst [vmem:[#allocation8] sm:$0xff] %v518_v4  ;;  %643 = vst [vmem:[#allocation8 + $0x10] sm:$0xff] %v571_v5  ;;  %v520_v6 = vpop.f32.mrb[1].mxu0  ;;  %v573_v7 = vpop.f32.mrb[1].mxu1 }
 0x13d   :  { %642 = vst [vmem:[#allocation8 + $0x8] sm:$0xff] %v520_v6  ;;  %644 = vst [vmem:[#allocation8 + $0x18] sm:$0xff] %v573_v7  ;;  %v522_v8 = vpop.f32.mrb[2].mxu0  ;;  %v575_v9 = vpop.f32.mrb[2].mxu1 }
 0x13e   :  { %645 = vst [vmem:[#allocation8 + $0x20] sm:$0xff] %v522_v8  ;;  %647 = vst [vmem:[#allocation8 + $0x30] sm:$0xff] %v575_v9  ;;  %v524_v10 = vpop.f32.mrb[3].mxu0  ;;  %v577_v11 = vpop.f32.mrb[3].mxu1 }
 0x13f   :  { %646 = vst [vmem:[#allocation8 + $0x28] sm:$0xff] %v524_v10  ;;  %648 = vst [vmem:[#allocation8 + $0x38] sm:$0xff] %v577_v11 }
 0x143   :  { %v528_v12 = vpop.f32.mrb[4].mxu0  ;;  %v581_v13 = vpop.f32.mrb[4].mxu1 }
 0x144   :  { %649 = vst [vmem:[#allocation8 + $0x40] sm:$0xff] %v528_v12  ;;  %651 = vst [vmem:[#allocation8 + $0x50] sm:$0xff] %v581_v13  ;;  %v530_v14 = vpop.f32.mrb[5].mxu0  ;;  %v583_v15 = vpop.f32.mrb[5].mxu1 }
 0x145   :  { %650 = vst [vmem:[#allocation8 + $0x48] sm:$0xff] %v530_v14  ;;  %652 = vst [vmem:[#allocation8 + $0x58] sm:$0xff] %v583_v15  ;;  %v532_v16 = vpop.f32.mrb[6].mxu0  ;;  %v585_v17 = vpop.f32.mrb[6].mxu1 }
 0x146   :  { %653 = vst [vmem:[#allocation8 + $0x60] sm:$0xff] %v532_v16  ;;  %655 = vst [vmem:[#allocation8 + $0x70] sm:$0xff] %v585_v17  ;;  %v534_v18 = vpop.f32.mrb[7].mxu0  ;;  %v587_v19 = vpop.f32.mrb[7].mxu1 }
 0x147   :  { %654 = vst [vmem:[#allocation8 + $0x68] sm:$0xff] %v534_v18  ;;  %656 = vst [vmem:[#allocation8 + $0x78] sm:$0xff] %v587_v19 }
 0x148   :  { %909 = shalt.err (!%p906_p6)
}
 0x149   :  { %s910_s12 = scalar_lea.hbm %s988_s2, 2048 }
 0x14a   :  { %p911_p7 = scmp.ne.s32.totalorder %s988_s2, %s910_s12  ;;  %p914_p8 = scmp.lt.u32.totalorder %s910_s12, %s988_s2 }
 0x14c   :  { %p916_p9 = pnand %p914_p8, %p911_p7 }
 0x14e   :  { %919 = shalt.err (!%p916_p9)
}
 0x14f   :  { %s933_s17 = smov 512   ;;  %s934_s18 = smov 32  }
 0x150   :  { %668 = dma.vmem_to_hbm [thread:$0]  %s663_s8, 2048, %s988_s2, [#allocation5], %s933_s17, %s933_s17, %s934_s18  }
 0x151   :  { %924 = dma.done.wait [#allocation5], 2048  }
 0x152   :  { %925 = vsyncadd [#allocation5], 4294965248 }
 0x153   :  { %672 = vsyncpa [#allocation4], 1 }
 0x154   :  { %673 = vsyncpa [#allocation7], 1 }
 0x155   :  { %674 = vsyncpa [#allocation5], 1 }

</bundles_post_ra>
